<compile_context>
chip_gen: v5e
topology: v5e:2x2
jax: 0.10.0
libtpu: 0.0.40
codegen_flags: <defaults>
</compile_context>

<pallas_src>
import functools

import jax
import jax.numpy as jnp
from jax import lax
from jax.experimental import pallas as pl
from jax.experimental.pallas import tpu as pltpu

_LANE = 128
_SUBLANE = 8
_NEG_BIG = -1e30  # finite "-inf": padded logit columns vanish from softmax


def _round_up(x, m):
    return (x + m - 1) // m * m


# -----------------------------------------------------------------------------
# One-time parameter preparation (hoisted out of the step loop).
# Fused column layout (lane-tile aligned), N_pad = H_pad + O_pad:
#   [0, H)            i2h (new hidden)
#   [H, H_pad)        zero padding
#   [H_pad, H_pad+O)  i2o (logits)
#   [H_pad+O, N_pad)  padding; bias = -1e30 so log-softmax ignores it
# Row split:  W_x = rows [0, I)   (input features; applied OUTSIDE recurrence)
#             W_h = rows [I, I+H) padded to H_pad (applied inside recurrence)
# -----------------------------------------------------------------------------
def prepare_params(params, mxu_dtype=jnp.float32):
    H, K = params["i2h_w"].shape          # (H, I+H)
    O = params["i2o_w"].shape[0]
    I = K - H
    H_pad = _round_up(H, _LANE)
    O_pad = _round_up(O, _LANE)
    N_pad = H_pad + O_pad

    w_full = jnp.zeros((K, N_pad), jnp.float32)
    w_full = w_full.at[:, :H].set(params["i2h_w"].T)
    w_full = w_full.at[:, H_pad:H_pad + O].set(params["i2o_w"].T)

    w_x = w_full[:I]                                                 # (I, N_pad)
    w_h = jnp.zeros((H_pad, N_pad), jnp.float32).at[:H].set(w_full[I:])

    b = jnp.zeros((1, N_pad), jnp.float32)
    b = b.at[:, :H].set(params["i2h_b"][None, :])
    b = b.at[:, H_pad:H_pad + O].set(params["i2o_b"][None, :])
    b = b.at[:, H_pad + O:].set(_NEG_BIG)

    return {
        "w_x": w_x.astype(mxu_dtype),   # bf16 OK on v5e/v6e/v7x (f32 acc)
        "w_h": w_h.astype(mxu_dtype),
        "b": b,                         # bias + softmax math stay f32
        "input_size": int(I),
        "hidden_size": int(H),
        "output_size": int(O),
        "h_pad": int(H_pad),
        "o_pad": int(O_pad),
        "n_pad": int(N_pad),
    }


def _log_softmax_tile(logits):
    # Numerically stable log-softmax over a full lane tile (f32, EUP exp/log).
    m = jnp.max(logits, axis=-1, keepdims=True)
    lse = m + jnp.log(jnp.sum(jnp.exp(logits - m), axis=-1, keepdims=True))
    return logits - lse


# -----------------------------------------------------------------------------
# Single-step kernel (exact RNN_net.forward semantics).  Compatibility shim:
# prefer rnn_net_forward_sequence for more than a couple of steps.
# -----------------------------------------------------------------------------
def _rnn_step_kernel(x_ref, h_ref, wx_ref, wh_ref, b_ref, out_ref, hout_ref):
    wx = wx_ref[...]
    wh = wh_ref[...]
    h_pad = wh.shape[0]
    acts = (jnp.dot(x_ref[...].astype(wx.dtype), wx,
                    preferred_element_type=jnp.float32)
            + jnp.dot(h_ref[...].astype(wh.dtype), wh,
                      preferred_element_type=jnp.float32)
            + b_ref[...])
    hout_ref[...] = acts[:, :h_pad]
    out_ref[...] = _log_softmax_tile(acts[:, h_pad:])


def rnn_net_forward(input_, hidden, prepared):
    """One RNN cell step. Returns (log_probs (B, O), new_hidden (B, H))."""
    B = input_.shape[0]
    H, O = prepared["hidden_size"], prepared["output_size"]
    H_pad, O_pad = prepared["h_pad"], prepared["o_pad"]
    B_pad = _round_up(B, _SUBLANE)

    x = input_ if B_pad == B else jnp.pad(input_, ((0, B_pad - B), (0, 0)))
    h = jnp.pad(hidden.astype(jnp.float32), ((0, B_pad - B), (0, H_pad - H)))

    out, h_new = pl.pallas_call(
        _rnn_step_kernel,
        out_shape=(jax.ShapeDtypeStruct((B_pad, O_pad), jnp.float32),
                   jax.ShapeDtypeStruct((B_pad, H_pad), jnp.float32)),
    )(x, h, prepared["w_x"], prepared["w_h"], prepared["b"])

    return out[:B, :O], h_new[:B, :H]


# -----------------------------------------------------------------------------
# Fused-recurrence kernel: whole sequence in ONE pallas_call, T_blk timesteps
# per grid iteration.  W_h / b / h0 stay resident in VMEM (constant block
# index); the hidden state is carried in vregs inside a block and in a VMEM
# scratch across blocks.  Only the log-prob tile is written per step; the
# final hidden is a single resident output block.
# -----------------------------------------------------------------------------
def _rnn_seq_kernel(xproj_ref, h0_ref, wh_ref, b_ref, out_ref, hfin_ref,
                    h_scr, *, seq_len, t_blk):
    tb = pl.program_id(0)

    @pl.when(tb == 0)
    def _():
        h_scr[...] = h0_ref[...]

    wh = wh_ref[...]
    b = b_ref[...]
    h_pad = wh.shape[0]

    def step(s, h):
        acts = jnp.dot(h.astype(wh.dtype), wh,
                       preferred_element_type=jnp.float32)
        acts = acts + xproj_ref[s] + b
        out_ref[s] = _log_softmax_tile(acts[:, h_pad:]).astype(out_ref.dtype)
        # Guard against T padding: keep the previous hidden on padded steps.
        valid = (tb * t_blk + s) < seq_len
        return jnp.where(valid, acts[:, :h_pad], h)

    h = lax.fori_loop(0, t_blk, step, h_scr[...], unroll=True)
    h_scr[...] = h
    hfin_ref[...] = h          # resident block -> one HBM writeback at the end


def rnn_net_forward_sequence(xs, h0, prepared, t_blk=8):
    """Run the RNN cell over xs: (T, B, I) with initial hidden h0: (B, H).

    Returns (log_probs (T, B, O), final_hidden (B, H)); semantically identical
    to T sequential calls of RNN_net.forward."""
    T, B, I = xs.shape
    H, O = prepared["hidden_size"], prepared["output_size"]
    H_pad, O_pad, N_pad = prepared["h_pad"], prepared["o_pad"], prepared["n_pad"]
    B_pad = _round_up(B, _SUBLANE)
    t_blk = max(1, min(t_blk, T))
    T_pad = _round_up(T, t_blk)
    num_blocks = T_pad // t_blk

    w_x = prepared["w_x"]

    xs_p = jnp.pad(xs, ((0, T_pad - T), (0, B_pad - B), (0, 0)))
    # Hoisted input projection: one big (T_pad*B_pad, I) x (I, N_pad) matmul.
    xproj = jnp.dot(xs_p.reshape(T_pad * B_pad, I).astype(w_x.dtype), w_x,
                    preferred_element_type=jnp.float32
                    ).reshape(T_pad, B_pad, N_pad)
    h0_p = jnp.pad(h0.astype(jnp.float32), ((0, B_pad - B), (0, H_pad - H)))

    out, h_fin = pl.pallas_call(
        functools.partial(_rnn_seq_kernel, seq_len=T, t_blk=t_blk),
        out_shape=(jax.ShapeDtypeStruct((T_pad, B_pad, O_pad), jnp.float32),
                   jax.ShapeDtypeStruct((B_pad, H_pad), jnp.float32)),
        grid=(num_blocks,),
        in_specs=[
            pl.BlockSpec((t_blk, B_pad, N_pad), lambda tb: (tb, 0, 0)),
            pl.BlockSpec((B_pad, H_pad), lambda tb: (0, 0)),     # h0 resident
            pl.BlockSpec((H_pad, N_pad), lambda tb: (0, 0)),     # W_h resident
            pl.BlockSpec((1, N_pad), lambda tb: (0, 0)),         # bias resident
        ],
        out_specs=(
            pl.BlockSpec((t_blk, B_pad, O_pad), lambda tb: (tb, 0, 0)),
            pl.BlockSpec((B_pad, H_pad), lambda tb: (0, 0)),     # final hidden
        ),
        scratch_shapes=[pltpu.VMEM((B_pad, H_pad), jnp.float32)],  # carry
        compiler_params=pltpu.CompilerParams(
            dimension_semantics=("arbitrary",),      # true recurrence over T
            vmem_limit_bytes=32 * 1024 * 1024),
    )(xproj, h0_p, prepared["w_h"], prepared["b"])

    return out[:T, :B, :O], h_fin[:B, :H]


# -----------------------------------------------------------------------------
# Init + pure-JAX reference.
# -----------------------------------------------------------------------------
def init_params(key, input_size, hidden_size, output_size):
    fan_in = input_size + hidden_size
    bound = float(fan_in) ** -0.5
    k1, k2, k3, k4 = jax.random.split(key, 4)
    return {
        "i2h_w": jax.random.uniform(k1, (hidden_size, fan_in), jnp.float32,
                                    -bound, bound),
        "i2h_b": jax.random.uniform(k2, (hidden_size,), jnp.float32,
                                    -bound, bound),
        "i2o_w": jax.random.uniform(k3, (output_size, fan_in), jnp.float32,
                                    -bound, bound),
        "i2o_b": jax.random.uniform(k4, (output_size,), jnp.float32,
                                    -bound, bound),
    }


def _reference_step(x, h, params):
    combined = jnp.concatenate([x, h], axis=1)
    new_h = combined @ params["i2h_w"].T + params["i2h_b"]
    logits = combined @ params["i2o_w"].T + params["i2o_b"]
    return jax.nn.log_softmax(logits, axis=1), new_h


if __name__ == "__main__":
    batch = 2
    input_size = 32
    hidden_size = 32
    output_size = 16
    seq_len = 8

    key = jax.random.PRNGKey(0)
    k_params, k_x, k_seq = jax.random.split(key, 3)
    params = init_params(k_params, input_size, hidden_size, output_size)

    prepared = prepare_params(params, mxu_dtype=jnp.float32)

    x = jax.random.normal(k_x, (batch, input_size), jnp.float32)
    h0 = jnp.zeros((batch, hidden_size), jnp.float32)    # init_hidden, batched

    # ---- single-step forward (module semantics) ----
    step_fn = jax.jit(lambda xi, hi: rnn_net_forward(xi, hi, prepared))
    out, new_h = jax.block_until_ready(step_fn(x, h0))
    ref_out, ref_h = _reference_step(x, h0, params)
    assert jnp.allclose(out, ref_out, atol=1e-5, rtol=1e-5)
    assert jnp.allclose(new_h, ref_h, atol=1e-5, rtol=1e-5)

    # ---- fused recurrence: whole sequence, blocked T ----
    xs = jax.random.normal(k_seq, (seq_len, batch, input_size), jnp.float32)
    seq_fn = jax.jit(functools.partial(rnn_net_forward_sequence,
                                       prepared=prepared, t_blk=4))
    seq_out, seq_h = jax.block_until_ready(seq_fn(xs, h0))

    h_ref = h0
    ref_outs = []
    for t in range(seq_len):
        o_t, h_ref = _reference_step(xs[t], h_ref, params)
        ref_outs.append(o_t)
    ref_outs = jnp.stack(ref_outs)
    assert jnp.allclose(seq_out, ref_outs, atol=1e-4, rtol=1e-4)
    assert jnp.allclose(seq_h, h_ref, atol=1e-4, rtol=1e-4)

    # ---- ragged T (exercises the T-padding guard, T=6 with t_blk=4) ----
    T2 = 6
    seq_out2, seq_h2 = jax.block_until_ready(
        jax.jit(functools.partial(rnn_net_forward_sequence,
                                  prepared=prepared, t_blk=4))(xs[:T2], h0))
    assert jnp.allclose(seq_out2, ref_outs[:T2], atol=1e-4, rtol=1e-4)
    h_ref2 = h0
    for t in range(T2):
        _, h_ref2 = _reference_step(xs[t], h_ref2, params)
    assert jnp.allclose(seq_h2, h_ref2, atol=1e-4, rtol=1e-4)

    # ---- bf16 MXU weights (valid on v5e/v6e/v7x), f32 accumulation ----
    prepared_bf16 = prepare_params(params, mxu_dtype=jnp.bfloat16)
    step_fn16 = jax.jit(lambda xi, hi: rnn_net_forward(xi, hi, prepared_bf16))
    out16, h16 = jax.block_until_ready(step_fn16(x, h0))
    assert jnp.allclose(out16, ref_out, atol=3e-2, rtol=3e-2)
    assert jnp.allclose(h16, ref_h, atol=3e-2, rtol=3e-2)

    print("KERNEL_OK")
</pallas_src>

<mosaic_0001>
module attributes {stable_mosaic.version = 11 : i64} {
  func.func @_rnn_step_kernel(%arg0: memref<8x32xf32, #tpu.memory_space<vmem>>, %arg1: memref<8x128xf32, #tpu.memory_space<vmem>>, %arg2: memref<32x256xf32, #tpu.memory_space<vmem>>, %arg3: memref<128x256xf32, #tpu.memory_space<vmem>>, %arg4: memref<1x256xf32, #tpu.memory_space<vmem>>, %arg5: memref<8x128xf32, #tpu.memory_space<vmem>>, %arg6: memref<8x128xf32, #tpu.memory_space<vmem>>) attributes {dimension_semantics = [], scalar_prefetch = 0 : i64, scratch_operands = 0 : i64, tpu.core_type = #tpu.core_type<tc>} {
    %c0 = arith.constant 0 : index
    %c0_0 = arith.constant 0 : index
    %0 = vector.load %arg2[%c0, %c0_0] : memref<32x256xf32, #tpu.memory_space<vmem>>, vector<32x256xf32>
    %c0_1 = arith.constant 0 : index
    %c0_2 = arith.constant 0 : index
    %1 = vector.load %arg3[%c0_1, %c0_2] : memref<128x256xf32, #tpu.memory_space<vmem>>, vector<128x256xf32>
    %c0_3 = arith.constant 0 : index
    %c0_4 = arith.constant 0 : index
    %2 = vector.load %arg0[%c0_3, %c0_4] : memref<8x32xf32, #tpu.memory_space<vmem>>, vector<8x32xf32>
    %cst = arith.constant dense<0.000000e+00> : vector<8x256xf32>
    %3 = tpu.matmul %2, %0, %cst {dimension_numbers = #tpu.dot_dimension_numbers<[1], [0], [0], [1], [0, 0, 1, 1], [], []>} : vector<8x32xf32>, vector<32x256xf32>, vector<8x256xf32> -> vector<8x256xf32>
    %c0_5 = arith.constant 0 : index
    %c0_6 = arith.constant 0 : index
    %4 = vector.load %arg1[%c0_5, %c0_6] : memref<8x128xf32, #tpu.memory_space<vmem>>, vector<8x128xf32>
    %cst_7 = arith.constant dense<0.000000e+00> : vector<8x256xf32>
    %5 = tpu.matmul %4, %1, %cst_7 {dimension_numbers = #tpu.dot_dimension_numbers<[1], [0], [0], [1], [0, 0, 1, 1], [], []>} : vector<8x128xf32>, vector<128x256xf32>, vector<8x256xf32> -> vector<8x256xf32>
    %6 = arith.addf %3, %5 : vector<8x256xf32>
    %c0_8 = arith.constant 0 : index
    %c0_9 = arith.constant 0 : index
    %7 = vector.load %arg4[%c0_8, %c0_9] : memref<1x256xf32, #tpu.memory_space<vmem>>, vector<1x256xf32>
    %8 = vector.broadcast %7 : vector<1x256xf32> to vector<8x256xf32>
    %9 = arith.addf %6, %8 : vector<8x256xf32>
    %10 = vector.extract_strided_slice %9 {offsets = [0, 0], sizes = [8, 128], strides = [1, 1]} : vector<8x256xf32> to vector<8x128xf32>
    %c0_10 = arith.constant 0 : index
    %c0_11 = arith.constant 0 : index
    %11 = vector.load %arg6[%c0_10, %c0_11] : memref<8x128xf32, #tpu.memory_space<vmem>>, vector<8x128xf32>
    tpu.vector_store %arg6[%c0_10, %c0_11], %10 {strides = array<i32>} : memref<8x128xf32, #tpu.memory_space<vmem>>, vector<8x128xf32>,
    %12 = vector.extract_strided_slice %9 {offsets = [0, 128], sizes = [8, 128], strides = [1, 1]} : vector<8x256xf32> to vector<8x128xf32>
    %cst_12 = arith.constant dense<0xFF800000> : vector<8xf32>
    %13 = vector.multi_reduction <maximumf>, %12, %cst_12 [1] : vector<8x128xf32> to vector<8xf32>
    %14 = vector.shape_cast %13 : vector<8xf32> to vector<8x1xf32>
    %15 = vector.broadcast %14 : vector<8x1xf32> to vector<8x128xf32>
    %16 = arith.subf %12, %15 : vector<8x128xf32>
    %17 = math.exp %16 : vector<8x128xf32>
    %cst_13 = arith.constant dense<0.000000e+00> : vector<8xf32>
    %18 = vector.multi_reduction <add>, %17, %cst_13 [1] : vector<8x128xf32> to vector<8xf32>
    %19 = vector.shape_cast %18 : vector<8xf32> to vector<8x1xf32>
    %20 = math.log %19 : vector<8x1xf32>
    %21 = arith.addf %14, %20 : vector<8x1xf32>
    %22 = vector.broadcast %21 : vector<8x1xf32> to vector<8x128xf32>
    %23 = arith.subf %12, %22 : vector<8x128xf32>
    %c0_14 = arith.constant 0 : index
    %c0_15 = arith.constant 0 : index
    %24 = vector.load %arg5[%c0_14, %c0_15] : memref<8x128xf32, #tpu.memory_space<vmem>>, vector<8x128xf32>
    tpu.vector_store %arg5[%c0_14, %c0_15], %23 {strides = array<i32>} : memref<8x128xf32, #tpu.memory_space<vmem>>, vector<8x128xf32>,
    return
  }
}

</mosaic_0001>

<bundles_post_ra>
// kernel: _lambda_.1
= control target key start
LH: loop header
LB: loop body
LE: loop exit
PB: predicated region body
PF: predicated region fallthrough
CT: control target
= control target key end

     0   :  { %12 = vsyncpa [#allocation3], 0  ;;  %s339_s0 = inlined_call_operand.vmem [shape: f32[8,32], index: 0, kind: input, shape index: {}]   ;;  %s340_s1 = inlined_call_operand.vmem [shape: f32[8,128], index: 1, kind: input, shape index: {}]   ;;  %s341_s2 = inlined_call_operand.hbm [shape: f32[32,256], index: 2, kind: input, shape index: {}]   ;;  %s342_s3 = inlined_call_operand.hbm [shape: f32[128,256], index: 3, kind: input, shape index: {}]   ;;  %s343_s4 = inlined_call_operand.vmem [shape: f32[1,256], index: 4, kind: input, shape index: {}]   ;;  %s344_s5 = inlined_call_operand.vmem [shape: f32[8,128], index: 5, kind: output, shape index: {0}]   ;;  %s345_s6 = inlined_call_operand.vmem [shape: f32[8,128], index: 6, kind: output, shape index: {1}]  }
   0x1   :  { %s22_s23 = sshll.u32 %s341_s2, 4  ;;  %s23_s23 = int_to_ptr.hbm [resolvable:$true] %s22_s23 }
   0x2   :  { %13 = vsyncpa [#allocation5], 0  ;;  %s273_s24 = smov [#allocation2]   ;;  %s35_s28 = sshll.u32 %s342_s3, 4  ;;  %s36_s28 = int_to_ptr.hbm [resolvable:$true] %s35_s28 }
   0x3   :  { %s24_s25 = sshll.u32 %s273_s24, 4  ;;  %s274_s29 = smov 256   ;;  %s25_s25 = int_to_ptr.vmem [resolvable:$true] %s24_s25 }
   0x4   :  { %s275_s30 = smov 16   ;;  %s276_s7 = smov [#allocation4]  }
   0x5   :  { %30 = dma.hbm_to_vmem [thread:$0]  %s23_s23, 1024, %s25_s25, [#allocation3], %s274_s29, %s274_s29, %s275_s30  }
   0x6   :  { %s37_s8 = sshll.u32 %s276_s7, 4  ;;  %s38_s8 = int_to_ptr.vmem [resolvable:$true] %s37_s8 }
   0x7   :  { %43 = dma.hbm_to_vmem [thread:$0]  %s36_s28, 4096, %s38_s8, [#allocation5], %s274_s29, %s274_s29, %s275_s30  }
   0x8   :  { %269 = dma.done.wait [#allocation3], 1024  }
   0x9   :  { %270 = vsyncadd [#allocation3], 4294966272 }
   0xa   :  { %271 = dma.done.wait [#allocation5], 4096  }
   0xb   :  { %272 = vsyncadd [#allocation5], 4294963200  ;;  %v93_v0 = vld [vmem:[#allocation4 + $0xf8] sm:$0xff]  ;;  %v91_v1 = vld [vmem:[#allocation4 + $0xe8] sm:$0xff]  ;;  %vm136_vm0 = vcmask 261120  }
   0xc   :  { %116 = vmatpush.msra.mxu1 %v93_v0  ;;  %v89_v2 = vld [vmem:[#allocation4 + $0xd8] sm:$0xff]  ;;  %v87_v4 = vld [vmem:[#allocation4 + $0xc8] sm:$0xff]  ;;  %v321_v10 = vld [vmem:[%s339_s0] sm:$0xff] }
   0xd   :  { %v61_v3 = vld [vmem:[#allocation2 + $0x38] sm:$0xff]  ;;  %v59_v5 = vld [vmem:[#allocation2 + $0x28] sm:$0xff]  ;;  %v95_v21 = vld [vmem:[%s340_s1] sm:$0xff] }
   0xe   :  { %117 = vmatpush.msra.mxu1 %v91_v1  ;;  %172 = vmatpush.msra.mxu3 %v61_v3  ;;  %v57_v6 = vld [vmem:[#allocation2 + $0x18] sm:$0xff]  ;;  %v55_v8 = vld [vmem:[#allocation2 + $0x8] sm:$0xff]  ;;  %v92_v22 = vld [vmem:[#allocation4 + $0xf0] sm:$0xff] }
   0xf   :  { %v85_v7 = vld [vmem:[#allocation4 + $0xb8] sm:$0xff]  ;;  %v83_v9 = vld [vmem:[#allocation4 + $0xa8] sm:$0xff]  ;;  %v90_v23 = vld [vmem:[#allocation4 + $0xe0] sm:$0xff]  ;;  %96 = vmatpush.msra.mxu0 %v92_v22 }
  0x10   :  { %118 = vmatpush.msra.mxu1 %v89_v2  ;;  %173 = vmatpush.msra.mxu3 %v59_v5  ;;  %v81_v11 = vld [vmem:[#allocation4 + $0x98] sm:$0xff]  ;;  %v79_v12 = vld [vmem:[#allocation4 + $0x88] sm:$0xff]  ;;  %v88_v24 = vld [vmem:[#allocation4 + $0xd0] sm:$0xff] }
  0x11   :  { %v77_v13 = vld [vmem:[#allocation4 + $0x78] sm:$0xff]  ;;  %v75_v14 = vld [vmem:[#allocation4 + $0x68] sm:$0xff]  ;;  %97 = vmatpush.msra.mxu0 %v90_v23  ;;  %v60_v25 = vld [vmem:[#allocation2 + $0x30] sm:$0xff] }
  0x12   :  { %119 = vmatpush.msra.mxu1 %v87_v4  ;;  %174 = vmatpush.msra.mxu3 %v57_v6  ;;  %v73_v15 = vld [vmem:[#allocation4 + $0x58] sm:$0xff]  ;;  %v71_v16 = vld [vmem:[#allocation4 + $0x48] sm:$0xff]  ;;  %v86_v26 = vld [vmem:[#allocation4 + $0xc0] sm:$0xff] }
  0x13   :  { %v69_v17 = vld [vmem:[#allocation4 + $0x38] sm:$0xff]  ;;  %v67_v18 = vld [vmem:[#allocation4 + $0x28] sm:$0xff]  ;;  %152 = vmatpush.msra.mxu2 %v60_v25  ;;  %v58_v27 = vld [vmem:[#allocation2 + $0x20] sm:$0xff]  ;;  %98 = vmatpush.msra.mxu0 %v88_v24 }
  0x14   :  { %120 = vmatpush.msra.mxu1 %v85_v7  ;;  %175 = vmatpush.msra.mxu3 %v55_v8  ;;  %v65_v19 = vld [vmem:[#allocation4 + $0x18] sm:$0xff]  ;;  %v63_v20 = vld [vmem:[#allocation4 + $0x8] sm:$0xff]  ;;  %v84_v28 = vld [vmem:[#allocation4 + $0xb0] sm:$0xff] }
  0x15   :  { %212 = vmatmul.msk.f32.vlgmr.msra.gmra.mxu3 %vm136_vm0, %v321_v10  ;;  %153 = vmatpush.msra.mxu2 %v58_v27  ;;  %v82_v29 = vld [vmem:[#allocation4 + $0xa0] sm:$0xff]  ;;  %v80_v30 = vld [vmem:[#allocation4 + $0x90] sm:$0xff] }
  0x16   :  { %121 = vmatpush.msra.mxu1 %v83_v9  ;;  %99 = vmatpush.msra.mxu0 %v86_v26  ;;  %v78_v31 = vld [vmem:[#allocation4 + $0x80] sm:$0xff]  ;;  %v76_v32 = vld [vmem:[#allocation4 + $0x70] sm:$0xff] }
  0x17   :  { %v74_v33 = vld [vmem:[#allocation4 + $0x60] sm:$0xff]  ;;  %v72_v34 = vld [vmem:[#allocation4 + $0x50] sm:$0xff] }
  0x18   :  { %122 = vmatpush.msra.mxu1 %v81_v11  ;;  %100 = vmatpush.msra.mxu0 %v84_v28  ;;  %v180_v35 = vld [vmem:[%s343_s4] sm:$0x3]  ;;  %v56_v42 = vld [vmem:[#allocation2 + $0x10] sm:$0xff] }
  0x19   :  { %v183_v37 = vperm.slane %v180_v35, 1  ;;  %v70_v41 = vld [vmem:[#allocation4 + $0x40] sm:$0xff]  ;;  %154 = vmatpush.msra.mxu2 %v56_v42  ;;  %v68_v43 = vld [vmem:[#allocation4 + $0x30] sm:$0xff]  ;;  %v182_v55 = vperm.slane %v180_v35, 0 }
  0x1a   :  { %123 = vmatpush.msra.mxu1 %v79_v12  ;;  %101 = vmatpush.msra.mxu0 %v82_v29  ;;  %v54_v44 = vld [vmem:[#allocation2] sm:$0xff]  ;;  %v64_v46 = vld [vmem:[#allocation4 + $0x10] sm:$0xff] }
  0x1b   :  { %155 = vmatpush.msra.mxu2 %v54_v44  ;;  %v66_v45 = vld [vmem:[#allocation4 + $0x20] sm:$0xff] }
  0x1c   :  { %124 = vmatpush.msra.mxu1 %v77_v13  ;;  %102 = vmatpush.msra.mxu0 %v80_v30  ;;  %v62_v47 = vld [vmem:[#allocation4] sm:$0xff] }
  0x1d   :  { %211 = vmatmul.msk.f32.vlgmr.msra.gmra.mxu2 %vm136_vm0, %v321_v10 }
  0x1e   :  { %125 = vmatpush.msra.mxu1 %v75_v14  ;;  %103 = vmatpush.msra.mxu0 %v78_v31 }
  0x20   :  { %126 = vmatpush.msra.mxu1 %v73_v15  ;;  %104 = vmatpush.msra.mxu0 %v76_v32 }
  0x22   :  { %127 = vmatpush.msra.mxu1 %v71_v16  ;;  %105 = vmatpush.msra.mxu0 %v74_v33 }
  0x24   :  { %128 = vmatpush.msra.mxu1 %v69_v17  ;;  %106 = vmatpush.msra.mxu0 %v72_v34 }
  0x26   :  { %129 = vmatpush.msra.mxu1 %v67_v18  ;;  %107 = vmatpush.msra.mxu0 %v70_v41 }
  0x28   :  { %130 = vmatpush.msra.mxu1 %v65_v19  ;;  %108 = vmatpush.msra.mxu0 %v68_v43 }
  0x2a   :  { %131 = vmatpush.msra.mxu1 %v63_v20  ;;  %109 = vmatpush.msra.mxu0 %v66_v45 }
  0x2b   :  { %132 = vmatmul.f32.vlgmr.msra.gmra.mxu1 %v95_v21 }
  0x2c   :  { %110 = vmatpush.msra.mxu0 %v64_v46 }
  0x2e   :  { %111 = vmatpush.msra.mxu0 %v62_v47 }
  0x2f   :  { %112 = vmatmul.f32.vlgmr.msra.gmra.mxu0 %v95_v21 }
  0x98   :  { %v177_v36 = vpop.f32.mrf.mxu3 }
  0xa0   :  { %v157_v53 = vpop.f32.mrf.mxu2 }
  0xa8   :  { %v133_v38 = vpop.f32.mrf.mxu1 }
  0xa9   :  { %v178_v39 = vadd.f32 %v177_v36, %v133_v38 }
  0xab   :  { %v187_v40 = vadd.f32 %v183_v37, %v178_v39 }
  0xac   :  { %v113_v52 = vpop.f32.mrf.mxu0 }
  0xad   :  { %189 = vmax.xlane.f32.xlu0 %v187_v40  ;;  %v158_v54 = vadd.f32 %v157_v53, %v113_v52 }
  0xaf   :  { %v186_v56 = vadd.f32 %v182_v55, %v158_v54 }
  0xb1   :  { %188 = vst [vmem:[%s345_s6] sm:$0xff] %v186_v56 }
 0x120   :  { %v190_v48 = vpop.xlane.xlu0 %189 }
 0x121   :  { %v191_v49 = vsub.f32 %v187_v40, %v190_v48 }
 0x123   :  { %v192_v50 = vmul.f32 1.442695, %v191_v49 }
 0x125   :  { %217 = vpow2.f32 %v192_v50 }
 0x12b   :  { %v218_v51 = vpop.eup %217 }
 0x12c   :  { %194 = vadd.xlane.f32.xlu0 %v218_v51 }
 0x19f   :  { %v195_v57 = vpop.xlane.xlu0 %194 }
 0x1a0   :  { %219 = vlog2.f32 %v195_v57 }
 0x1a6   :  { %v220_v58 = vpop.eup %219 }
 0x1a7   :  { %v197_v59 = vmul.f32 0.6931472, %v220_v58 }
 0x1a9   :  { %v198_v60 = vadd.f32 %v197_v59, %v190_v48 }
 0x1ab   :  { %v199_v61 = vsub.f32 %v187_v40, %v198_v60 }
 0x1ad   :  { %200 = vst [vmem:[%s344_s5] sm:$0xff] %v199_v61 }
 0x1ae   :  { %209 = vsyncpa [#allocation3], 1 }
 0x1af   :  { %210 = vsyncpa [#allocation5], 1 }

</bundles_post_ra>
